<compile_context>
chip_gen: v6e
topology: v6e:2x2x1
jax: 0.10.0
libtpu: 0.0.40
codegen_flags: <defaults>
</compile_context>

<pallas_src>
import functools
import math

import jax
import jax.numpy as jnp
from jax import lax
from jax.experimental import pallas as pl
from jax.experimental.pallas import tpu as pltpu

# ----------------------------- model config ---------------------------------
D_MODEL = 32
NHEAD = 4
DIM_FF = 64
SEQ = 8
BATCH = 2
HEAD_DIM = D_MODEL // NHEAD
LN_EPS = 1e-5


# ------------------------------ Pallas kernel --------------------------------
def encoder_layer_kernel(x_ref, wqkv_ref, rest_ref, o_ref, *, batch, nhead,
                         dim_ff):
    """One invocation == the whole layer.

    x_ref    : (S*B, D)       flattened input rows (seq-major: row r -> batch r%B)
    wqkv_ref : (D+1, 3D)      rows 0:D = [Wq^T*s | Wk^T | Wv^T], row D = bias
                              (q columns carry the 1/sqrt(head_dim) scale)
    rest_ref : (2D+F+7, lane) rows 0:D W1^T | b1 | W2^T | Wout^T | bout | b2 |
                              norm1.w | norm1.b | norm2.w | norm2.b
    o_ref    : (S*B, D)
    """
    bs, d = x_ref.shape
    hd = d // nhead
    f = dim_ff

    x = x_ref[...]                                          # (BS, D) f32

    # ---- static views into the packed parameter slabs -----------------------
    wqkvT = wqkv_ref[0:d, :]                                # (D, 3D)
    bqkv = wqkv_ref[d:d + 1, :]                             # (1, 3D)

    w1t = rest_ref[0:d, 0:f]                                # (D, F)
    b1 = rest_ref[d:d + 1, 0:f]                             # (1, F)
    r0 = d + 1
    w2t = rest_ref[r0:r0 + f, 0:d]                          # (F, D)
    r1 = r0 + f
    woutT = rest_ref[r1:r1 + d, 0:d]                        # (D, D)
    r2 = r1 + d
    bout = rest_ref[r2 + 0:r2 + 1, 0:d]                     # (1, D)
    b2 = rest_ref[r2 + 1:r2 + 2, 0:d]
    g1 = rest_ref[r2 + 2:r2 + 3, 0:d]
    beta1 = rest_ref[r2 + 3:r2 + 4, 0:d]
    g2 = rest_ref[r2 + 4:r2 + 5, 0:d]
    beta2 = rest_ref[r2 + 5:r2 + 6, 0:d]

    # ---- fused QKV projection: one MXU call ----------------------------------
    qkv = jnp.dot(x, wqkvT, preferred_element_type=jnp.float32) + bqkv  # (BS,3D)

    # split heads with static lane slices (cheaper than 12 K=8 matmuls)
    qh = jnp.stack([qkv[:, h * hd:(h + 1) * hd]
                    for h in range(nhead)], axis=0)                      # (H,BS,hd)
    kh = jnp.stack([qkv[:, d + h * hd:d + (h + 1) * hd]
                    for h in range(nhead)], axis=0)
    vh = jnp.stack([qkv[:, 2 * d + h * hd:2 * d + (h + 1) * hd]
                    for h in range(nhead)], axis=0)

    bmm_nt = (((2,), (1,)), ((0,), (0,)))                   # 'hnk,hkm->hnm'
    bmm_tt = (((2,), (2,)), ((0,), (0,)))                   # 'hnk,hmk->hnm'

    # scores; 1/sqrt(head_dim) is already folded into the q columns
    s = lax.dot_general(qh, kh, bmm_tt,
                        preferred_element_type=jnp.float32)              # (H,BS,BS)

    # block-diagonal mask: seq-major rows, row r belongs to batch r % batch
    row_b = lax.broadcasted_iota(jnp.int32, (bs, bs), 0) % batch
    col_b = lax.broadcasted_iota(jnp.int32, (bs, bs), 1) % batch
    same = jnp.broadcast_to((row_b == col_b)[None, :, :], s.shape)
    s = jnp.where(same, s, -1e30)

    # numerically-stable softmax; masked entries underflow to exact 0
    s = s - jnp.max(s, axis=-1, keepdims=True)
    p = jnp.exp(s)
    # exact reciprocal keeps the 1e-4 check tight; at production sizes use
    # approx=True to push the divide onto the otherwise-idle EUP slot.
    p = p * pl.reciprocal(jnp.sum(p, axis=-1, keepdims=True), approx=False)

    ctx = lax.dot_general(p, vh, bmm_nt,
                          preferred_element_type=jnp.float32)            # (H,BS,hd)

    # merge heads along lanes -> single (BS,D)x(D,D) out-projection matmul
    ctx_m = jnp.concatenate([ctx[h] for h in range(nhead)], axis=-1)     # (BS, D)
    attn = jnp.dot(ctx_m, woutT, preferred_element_type=jnp.float32) + bout

    # ---- residual + LayerNorm1 (dropout1 = identity in eval) -----------------
    x1 = x + attn
    mu1 = jnp.mean(x1, axis=-1, keepdims=True)
    c1 = x1 - mu1
    var1 = jnp.mean(c1 * c1, axis=-1, keepdims=True)
    y = c1 * lax.rsqrt(var1 + LN_EPS) * g1 + beta1

    # ---- feed-forward: linear1 -> relu -> linear2 (dropout = identity) -------
    h1 = jnp.dot(y, w1t, preferred_element_type=jnp.float32) + b1
    h1 = jnp.maximum(h1, 0.0)
    ff = jnp.dot(h1, w2t, preferred_element_type=jnp.float32) + b2

    # ---- residual + LayerNorm2 (dropout2 = identity in eval) -----------------
    x2 = y + ff
    mu2 = jnp.mean(x2, axis=-1, keepdims=True)
    c2 = x2 - mu2
    var2 = jnp.mean(c2 * c2, axis=-1, keepdims=True)
    o_ref[...] = c2 * lax.rsqrt(var2 + LN_EPS) * g2 + beta2


# ------------------------------ packing (load-time, NOT per call) -------------
def pack_params(p, nhead=NHEAD):
    """Pack the 12 PyTorch tensors into 2 lane-dense slabs.

    Call ONCE at model-load time; the packed slabs are what the jitted forward
    takes (no per-call transpose/split/stack traffic).
    """
    f, d = p["w1"].shape
    hd = d // nhead
    scale = 1.0 / math.sqrt(hd)

    wq, wk, wv = jnp.split(p["in_proj_weight"], 3, axis=0)       # (D, D) each
    bq, bk, bv = jnp.split(p["in_proj_bias"], 3)                 # (D,)  each

    # fused x @ Wqkv^T layout; softmax scale folded into the q columns / bias
    wqkvT = jnp.concatenate([wq.T * scale, wk.T, wv.T], axis=1)  # (D, 3D)
    bqkv = jnp.concatenate([bq * scale, bk, bv])[None, :]        # (1, 3D)
    wqkv_slab = jnp.concatenate([wqkvT, bqkv], axis=0)           # (D+1, 3D)

    lane = max(f, d)

    def pad_cols(m):
        return jnp.pad(m, ((0, 0), (0, lane - m.shape[1])))

    rest_slab = jnp.concatenate([
        pad_cols(p["w1"].T),                   # rows 0:D        (D, F)
        pad_cols(p["b1"][None, :]),            # row  D          (1, F)
        pad_cols(p["w2"].T),                   # rows D+1:D+1+F  (F, D)
        pad_cols(p["out_proj_weight"].T),      # next D rows     (D, D)
        pad_cols(p["out_proj_bias"][None, :]),
        pad_cols(p["b2"][None, :]),
        pad_cols(p["g1"][None, :]), pad_cols(p["beta1"][None, :]),
        pad_cols(p["g2"][None, :]), pad_cols(p["beta2"][None, :]),
    ], axis=0)                                 # (2D+F+7, lane)
    return wqkv_slab, rest_slab


# ------------------------------ forward wrapper --------------------------------
@functools.partial(jax.jit, static_argnames=("nhead", "dim_ff"))
def transformer_encoder_layer(src_sbd, wqkv_slab, rest_slab, *, nhead, dim_ff):
    """src_sbd: (S, B, d_model) float32 (PyTorch layout). Returns (S, B, d_model).

    Weights must already be packed with pack_params() (done once at load time).
    """
    S, B, D = src_sbd.shape
    x = src_sbd.reshape(S * B, D)       # seq-major rows; pure view, no transpose

    out = pl.pallas_call(
        functools.partial(encoder_layer_kernel, batch=B, nhead=nhead,
                          dim_ff=dim_ff),
        out_shape=jax.ShapeDtypeStruct((S * B, D), jnp.float32),
        in_specs=[pl.BlockSpec(memory_space=pltpu.MemorySpace.VMEM)] * 3,
        out_specs=pl.BlockSpec(memory_space=pltpu.MemorySpace.VMEM),
    )(x, wqkv_slab, rest_slab)

    return out.reshape(S, B, D)


# ------------------------------ reference (pure JAX) ---------------------------
def reference_forward(src_sbd, p):
    x = jnp.transpose(src_sbd, (1, 0, 2))                         # (B, S, D)
    B, S, D = x.shape
    qkv = jnp.einsum("bsd,ed->bse", x, p["in_proj_weight"]) + p["in_proj_bias"]
    q, k, v = jnp.split(qkv, 3, axis=-1)

    def split_heads(t):
        return t.reshape(B, S, NHEAD, HEAD_DIM).transpose(0, 2, 1, 3)

    qh, kh, vh = split_heads(q), split_heads(k), split_heads(v)
    scores = jnp.einsum("bhqd,bhkd->bhqk", qh, kh) / math.sqrt(HEAD_DIM)
    attn = jax.nn.softmax(scores, axis=-1)
    o = jnp.einsum("bhqk,bhkd->bhqd", attn, vh)
    o = o.transpose(0, 2, 1, 3).reshape(B, S, D)
    o = jnp.einsum("bsd,ed->bse", o, p["out_proj_weight"]) + p["out_proj_bias"]

    def ln(t, g, b):
        mu = jnp.mean(t, axis=-1, keepdims=True)
        var = jnp.mean((t - mu) ** 2, axis=-1, keepdims=True)
        return (t - mu) / jnp.sqrt(var + LN_EPS) * g + b

    x1 = ln(x + o, p["g1"], p["beta1"])
    h = jax.nn.relu(jnp.einsum("bsd,fd->bsf", x1, p["w1"]) + p["b1"])
    ff = jnp.einsum("bsf,df->bsd", h, p["w2"]) + p["b2"]
    x2 = ln(x1 + ff, p["g2"], p["beta2"])
    return jnp.transpose(x2, (1, 0, 2))


# ------------------------------ main -------------------------------------------
if __name__ == "__main__":
    key = jax.random.PRNGKey(0)
    keys = jax.random.split(key, 10)

    def init(k, shape, scale=0.05):
        return jax.random.normal(k, shape, dtype=jnp.float32) * scale

    params = {
        "in_proj_weight":  init(keys[0], (3 * D_MODEL, D_MODEL)),
        "in_proj_bias":    init(keys[1], (3 * D_MODEL,)),
        "out_proj_weight": init(keys[2], (D_MODEL, D_MODEL)),
        "out_proj_bias":   init(keys[3], (D_MODEL,)),
        "w1":              init(keys[4], (DIM_FF, D_MODEL)),
        "b1":              init(keys[5], (DIM_FF,)),
        "w2":              init(keys[6], (D_MODEL, DIM_FF)),
        "b2":              init(keys[7], (D_MODEL,)),
        "g1":    jnp.ones((D_MODEL,), jnp.float32),
        "beta1": jnp.zeros((D_MODEL,), jnp.float32),
        "g2":    jnp.ones((D_MODEL,), jnp.float32),
        "beta2": jnp.zeros((D_MODEL,), jnp.float32),
    }

    src = jax.random.normal(keys[8], (SEQ, BATCH, D_MODEL), dtype=jnp.float32)

    # pack ONCE (model-load time), not in the per-call path
    wqkv_slab, rest_slab = jax.block_until_ready(pack_params(params))

    out = jax.block_until_ready(
        transformer_encoder_layer(src, wqkv_slab, rest_slab,
                                  nhead=NHEAD, dim_ff=DIM_FF))
    ref = jax.block_until_ready(reference_forward(src, params))

    assert out.shape == (SEQ, BATCH, D_MODEL)
    max_err = float(jnp.max(jnp.abs(out - ref)))
    assert jnp.allclose(out, ref, atol=1e-4, rtol=1e-4), f"max abs err {max_err}"

    print("KERNEL_OK")
</pallas_src>

<mosaic_0001>
module attributes {stable_mosaic.version = 11 : i64} {
  func.func @encoder_layer_kernel(%arg0: memref<16x32xf32, #tpu.memory_space<vmem>>, %arg1: memref<33x96xf32, #tpu.memory_space<vmem>>, %arg2: memref<135x64xf32, #tpu.memory_space<vmem>>, %arg3: memref<16x32xf32, #tpu.memory_space<vmem>>) attributes {dimension_semantics = [], scalar_prefetch = 0 : i64, scratch_operands = 0 : i64, tpu.core_type = #tpu.core_type<tc>} {
    %c0 = arith.constant 0 : index
    %c0_0 = arith.constant 0 : index
    %0 = vector.load %arg0[%c0, %c0_0] : memref<16x32xf32, #tpu.memory_space<vmem>>, vector<16x32xf32>
    %c0_1 = arith.constant 0 : index
    %c0_2 = arith.constant 0 : index
    %1 = vector.load %arg1[%c0_1, %c0_2] : memref<33x96xf32, #tpu.memory_space<vmem>>, vector<32x96xf32>
    %c32 = arith.constant 32 : index
    %c0_3 = arith.constant 0 : index
    %2 = vector.load %arg1[%c32, %c0_3] : memref<33x96xf32, #tpu.memory_space<vmem>>, vector<1x96xf32>
    %c0_4 = arith.constant 0 : index
    %c0_5 = arith.constant 0 : index
    %3 = vector.load %arg2[%c0_4, %c0_5] : memref<135x64xf32, #tpu.memory_space<vmem>>, vector<32x64xf32>
    %c32_6 = arith.constant 32 : index
    %c0_7 = arith.constant 0 : index
    %4 = vector.load %arg2[%c32_6, %c0_7] : memref<135x64xf32, #tpu.memory_space<vmem>>, vector<1x64xf32>
    %c33 = arith.constant 33 : index
    %c0_8 = arith.constant 0 : index
    %5 = vector.load %arg2[%c33, %c0_8] : memref<135x64xf32, #tpu.memory_space<vmem>>, vector<64x32xf32>
    %c97 = arith.constant 97 : index
    %c0_9 = arith.constant 0 : index
    %6 = vector.load %arg2[%c97, %c0_9] : memref<135x64xf32, #tpu.memory_space<vmem>>, vector<32x32xf32>
    %c129 = arith.constant 129 : index
    %c0_10 = arith.constant 0 : index
    %7 = vector.load %arg2[%c129, %c0_10] : memref<135x64xf32, #tpu.memory_space<vmem>>, vector<1x32xf32>
    %c130 = arith.constant 130 : index
    %c0_11 = arith.constant 0 : index
    %8 = vector.load %arg2[%c130, %c0_11] : memref<135x64xf32, #tpu.memory_space<vmem>>, vector<1x32xf32>
    %c131 = arith.constant 131 : index
    %c0_12 = arith.constant 0 : index
    %9 = vector.load %arg2[%c131, %c0_12] : memref<135x64xf32, #tpu.memory_space<vmem>>, vector<1x32xf32>
    %c132 = arith.constant 132 : index
    %c0_13 = arith.constant 0 : index
    %10 = vector.load %arg2[%c132, %c0_13] : memref<135x64xf32, #tpu.memory_space<vmem>>, vector<1x32xf32>
    %c133 = arith.constant 133 : index
    %c0_14 = arith.constant 0 : index
    %11 = vector.load %arg2[%c133, %c0_14] : memref<135x64xf32, #tpu.memory_space<vmem>>, vector<1x32xf32>
    %c134 = arith.constant 134 : index
    %c0_15 = arith.constant 0 : index
    %12 = vector.load %arg2[%c134, %c0_15] : memref<135x64xf32, #tpu.memory_space<vmem>>, vector<1x32xf32>
    %cst = arith.constant dense<0.000000e+00> : vector<16x96xf32>
    %13 = tpu.matmul %0, %1, %cst {dimension_numbers = #tpu.dot_dimension_numbers<[1], [0], [0], [1], [0, 0, 1, 1], [], []>} : vector<16x32xf32>, vector<32x96xf32>, vector<16x96xf32> -> vector<16x96xf32>
    %14 = vector.broadcast %2 : vector<1x96xf32> to vector<16x96xf32>
    %15 = arith.addf %13, %14 : vector<16x96xf32>
    %16 = vector.extract_strided_slice %15 {offsets = [0, 0], sizes = [16, 8], strides = [1, 1]} : vector<16x96xf32> to vector<16x8xf32>
    %17 = vector.extract_strided_slice %15 {offsets = [0, 8], sizes = [16, 8], strides = [1, 1]} : vector<16x96xf32> to vector<16x8xf32>
    %18 = vector.extract_strided_slice %15 {offsets = [0, 16], sizes = [16, 8], strides = [1, 1]} : vector<16x96xf32> to vector<16x8xf32>
    %19 = vector.extract_strided_slice %15 {offsets = [0, 24], sizes = [16, 8], strides = [1, 1]} : vector<16x96xf32> to vector<16x8xf32>
    %20 = vector.shape_cast %16 : vector<16x8xf32> to vector<1x16x8xf32>
    %21 = vector.shape_cast %17 : vector<16x8xf32> to vector<1x16x8xf32>
    %22 = vector.shape_cast %18 : vector<16x8xf32> to vector<1x16x8xf32>
    %23 = vector.shape_cast %19 : vector<16x8xf32> to vector<1x16x8xf32>
    %24 = tpu.concatenate %20, %21, %22, %23 in 0 : vector<1x16x8xf32>, vector<1x16x8xf32>, vector<1x16x8xf32>, vector<1x16x8xf32> -> vector<4x16x8xf32>
    %25 = vector.extract_strided_slice %15 {offsets = [0, 32], sizes = [16, 8], strides = [1, 1]} : vector<16x96xf32> to vector<16x8xf32>
    %26 = vector.extract_strided_slice %15 {offsets = [0, 40], sizes = [16, 8], strides = [1, 1]} : vector<16x96xf32> to vector<16x8xf32>
    %27 = vector.extract_strided_slice %15 {offsets = [0, 48], sizes = [16, 8], strides = [1, 1]} : vector<16x96xf32> to vector<16x8xf32>
    %28 = vector.extract_strided_slice %15 {offsets = [0, 56], sizes = [16, 8], strides = [1, 1]} : vector<16x96xf32> to vector<16x8xf32>
    %29 = vector.shape_cast %25 : vector<16x8xf32> to vector<1x16x8xf32>
    %30 = vector.shape_cast %26 : vector<16x8xf32> to vector<1x16x8xf32>
    %31 = vector.shape_cast %27 : vector<16x8xf32> to vector<1x16x8xf32>
    %32 = vector.shape_cast %28 : vector<16x8xf32> to vector<1x16x8xf32>
    %33 = tpu.concatenate %29, %30, %31, %32 in 0 : vector<1x16x8xf32>, vector<1x16x8xf32>, vector<1x16x8xf32>, vector<1x16x8xf32> -> vector<4x16x8xf32>
    %34 = vector.extract_strided_slice %15 {offsets = [0, 64], sizes = [16, 8], strides = [1, 1]} : vector<16x96xf32> to vector<16x8xf32>
    %35 = vector.extract_strided_slice %15 {offsets = [0, 72], sizes = [16, 8], strides = [1, 1]} : vector<16x96xf32> to vector<16x8xf32>
    %36 = vector.extract_strided_slice %15 {offsets = [0, 80], sizes = [16, 8], strides = [1, 1]} : vector<16x96xf32> to vector<16x8xf32>
    %37 = vector.extract_strided_slice %15 {offsets = [0, 88], sizes = [16, 8], strides = [1, 1]} : vector<16x96xf32> to vector<16x8xf32>
    %38 = vector.shape_cast %34 : vector<16x8xf32> to vector<1x16x8xf32>
    %39 = vector.shape_cast %35 : vector<16x8xf32> to vector<1x16x8xf32>
    %40 = vector.shape_cast %36 : vector<16x8xf32> to vector<1x16x8xf32>
    %41 = vector.shape_cast %37 : vector<16x8xf32> to vector<1x16x8xf32>
    %42 = tpu.concatenate %38, %39, %40, %41 in 0 : vector<1x16x8xf32>, vector<1x16x8xf32>, vector<1x16x8xf32>, vector<1x16x8xf32> -> vector<4x16x8xf32>
    %cst_16 = arith.constant dense<0.000000e+00> : vector<4x16x16xf32>
    %43 = tpu.matmul %24, %33, %cst_16 {dimension_numbers = #tpu.dot_dimension_numbers<[2], [2], [1], [1], [0, 0, 0, 1, 1, 1], [0], [0]>} : vector<4x16x8xf32>, vector<4x16x8xf32>, vector<4x16x16xf32> -> vector<4x16x16xf32>
    %44 = tpu.iota {dimensions = array<i32: 0>} : vector<16x16xi32>
    %c2_i32 = arith.constant 2 : i32
    %c0_i32 = arith.constant 0 : i32
    %45 = arith.cmpi eq, %c2_i32, %c0_i32 : i32
    %c1_i32 = arith.constant 1 : i32
    %46 = arith.select %45, %c1_i32, %c2_i32 : i32
    %47 = vector.broadcast %46 : i32 to vector<16x16xi32>
    %48 = arith.remsi %44, %47 : vector<16x16xi32>
    %c0_i32_17 = arith.constant 0 : i32
    %49 = vector.broadcast %c0_i32_17 : i32 to vector<16x16xi32>
    %50 = arith.cmpi ne, %48, %49 : vector<16x16xi32>
    %c0_i32_18 = arith.constant 0 : i32
    %51 = vector.broadcast %c0_i32_18 : i32 to vector<16x16xi32>
    %52 = arith.cmpi slt, %48, %51 : vector<16x16xi32>
    %c0_i32_19 = arith.constant 0 : i32
    %53 = arith.cmpi slt, %46, %c0_i32_19 : i32
    %54 = vector.broadcast %53 : i1 to vector<16x16xi1>
    %55 = vector.broadcast %54 : vector<16x16xi1> to vector<16x16xi1>
    %56 = arith.xori %52, %55 : vector<16x16xi1>
    %57 = arith.andi %56, %50 : vector<16x16xi1>
    %58 = vector.broadcast %46 : i32 to vector<16x16xi32>
    %59 = arith.addi %48, %58 : vector<16x16xi32>
    %60 = arith.select %57, %59, %48 : vector<16x16xi1>, vector<16x16xi32>
    %61 = tpu.iota {dimensions = array<i32: 1>} : vector<16x16xi32>
    %c2_i32_20 = arith.constant 2 : i32
    %c0_i32_21 = arith.constant 0 : i32
    %62 = arith.cmpi eq, %c2_i32_20, %c0_i32_21 : i32
    %c1_i32_22 = arith.constant 1 : i32
    %63 = arith.select %62, %c1_i32_22, %c2_i32_20 : i32
    %64 = vector.broadcast %63 : i32 to vector<16x16xi32>
    %65 = arith.remsi %61, %64 : vector<16x16xi32>
    %c0_i32_23 = arith.constant 0 : i32
    %66 = vector.broadcast %c0_i32_23 : i32 to vector<16x16xi32>
    %67 = arith.cmpi ne, %65, %66 : vector<16x16xi32>
    %c0_i32_24 = arith.constant 0 : i32
    %68 = vector.broadcast %c0_i32_24 : i32 to vector<16x16xi32>
    %69 = arith.cmpi slt, %65, %68 : vector<16x16xi32>
    %c0_i32_25 = arith.constant 0 : i32
    %70 = arith.cmpi slt, %63, %c0_i32_25 : i32
    %71 = vector.broadcast %70 : i1 to vector<16x16xi1>
    %72 = vector.broadcast %71 : vector<16x16xi1> to vector<16x16xi1>
    %73 = arith.xori %69, %72 : vector<16x16xi1>
    %74 = arith.andi %73, %67 : vector<16x16xi1>
    %75 = vector.broadcast %63 : i32 to vector<16x16xi32>
    %76 = arith.addi %65, %75 : vector<16x16xi32>
    %77 = arith.select %74, %76, %65 : vector<16x16xi1>, vector<16x16xi32>
    %78 = arith.cmpi eq, %60, %77 : vector<16x16xi32>
    %79 = vector.shape_cast %78 : vector<16x16xi1> to vector<1x16x16xi1>
    %80 = vector.shape_cast %79 : vector<1x16x16xi1> to vector<1x16x16xi1>
    %81 = vector.broadcast %80 : vector<1x16x16xi1> to vector<4x16x16xi1>
    %cst_26 = arith.constant -1.000000e+30 : f32
    %82 = vector.broadcast %cst_26 : f32 to vector<4x16x16xf32>
    %83 = arith.select %81, %43, %82 : vector<4x16x16xi1>, vector<4x16x16xf32>
    %cst_27 = arith.constant dense<0xFF800000> : vector<4x16xf32>
    %84 = vector.multi_reduction <maximumf>, %83, %cst_27 [2] : vector<4x16x16xf32> to vector<4x16xf32>
    %85 = vector.shape_cast %84 : vector<4x16xf32> to vector<4x16x1xf32>
    %86 = vector.broadcast %85 : vector<4x16x1xf32> to vector<4x16x16xf32>
    %87 = arith.subf %83, %86 : vector<4x16x16xf32>
    %88 = math.exp %87 : vector<4x16x16xf32>
    %cst_28 = arith.constant dense<0.000000e+00> : vector<4x16xf32>
    %89 = vector.multi_reduction <add>, %88, %cst_28 [2] : vector<4x16x16xf32> to vector<4x16xf32>
    %90 = vector.shape_cast %89 : vector<4x16xf32> to vector<4x16x1xf32>
    %91 = tpu.reciprocal %90 : vector<4x16x1xf32> -> vector<4x16x1xf32>
    %92 = vector.broadcast %91 : vector<4x16x1xf32> to vector<4x16x16xf32>
    %93 = arith.mulf %88, %92 : vector<4x16x16xf32>
    %cst_29 = arith.constant dense<0.000000e+00> : vector<4x16x8xf32>
    %94 = tpu.matmul %93, %42, %cst_29 {dimension_numbers = #tpu.dot_dimension_numbers<[2], [1], [1], [2], [0, 0, 0, 1, 1, 2], [0], [0]>} : vector<4x16x16xf32>, vector<4x16x8xf32>, vector<4x16x8xf32> -> vector<4x16x8xf32>
    %95 = vector.extract_strided_slice %94 {offsets = [0, 0, 0], sizes = [1, 16, 8], strides = [1, 1, 1]} : vector<4x16x8xf32> to vector<1x16x8xf32>
    %96 = vector.shape_cast %95 : vector<1x16x8xf32> to vector<16x8xf32>
    %97 = vector.extract_strided_slice %94 {offsets = [1, 0, 0], sizes = [1, 16, 8], strides = [1, 1, 1]} : vector<4x16x8xf32> to vector<1x16x8xf32>
    %98 = vector.shape_cast %97 : vector<1x16x8xf32> to vector<16x8xf32>
    %99 = vector.extract_strided_slice %94 {offsets = [2, 0, 0], sizes = [1, 16, 8], strides = [1, 1, 1]} : vector<4x16x8xf32> to vector<1x16x8xf32>
    %100 = vector.shape_cast %99 : vector<1x16x8xf32> to vector<16x8xf32>
    %101 = vector.extract_strided_slice %94 {offsets = [3, 0, 0], sizes = [1, 16, 8], strides = [1, 1, 1]} : vector<4x16x8xf32> to vector<1x16x8xf32>
    %102 = vector.shape_cast %101 : vector<1x16x8xf32> to vector<16x8xf32>
    %103 = tpu.concatenate %96, %98, %100, %102 in 1 : vector<16x8xf32>, vector<16x8xf32>, vector<16x8xf32>, vector<16x8xf32> -> vector<16x32xf32>
    %cst_30 = arith.constant dense<0.000000e+00> : vector<16x32xf32>
    %104 = tpu.matmul %103, %6, %cst_30 {dimension_numbers = #tpu.dot_dimension_numbers<[1], [0], [0], [1], [0, 0, 1, 1], [], []>} : vector<16x32xf32>, vector<32x32xf32>, vector<16x32xf32> -> vector<16x32xf32>
    %105 = vector.broadcast %7 : vector<1x32xf32> to vector<16x32xf32>
    %106 = arith.addf %104, %105 : vector<16x32xf32>
    %107 = arith.addf %0, %106 : vector<16x32xf32>
    %cst_31 = arith.constant dense<0.000000e+00> : vector<16xf32>
    %108 = vector.multi_reduction <add>, %107, %cst_31 [1] : vector<16x32xf32> to vector<16xf32>
    %109 = vector.shape_cast %108 : vector<16xf32> to vector<16x1xf32>
    %cst_32 = arith.constant 3.200000e+01 : f32
    %110 = vector.broadcast %cst_32 : f32 to vector<16x1xf32>
    %111 = arith.divf %109, %110 : vector<16x1xf32>
    %112 = vector.broadcast %111 : vector<16x1xf32> to vector<16x32xf32>
    %113 = arith.subf %107, %112 : vector<16x32xf32>
    %114 = arith.mulf %113, %113 : vector<16x32xf32>
    %cst_33 = arith.constant dense<0.000000e+00> : vector<16xf32>
    %115 = vector.multi_reduction <add>, %114, %cst_33 [1] : vector<16x32xf32> to vector<16xf32>
    %116 = vector.shape_cast %115 : vector<16xf32> to vector<16x1xf32>
    %cst_34 = arith.constant 3.200000e+01 : f32
    %117 = vector.broadcast %cst_34 : f32 to vector<16x1xf32>
    %118 = arith.divf %116, %117 : vector<16x1xf32>
    %cst_35 = arith.constant 9.99999974E-6 : f32
    %119 = vector.broadcast %cst_35 : f32 to vector<16x1xf32>
    %120 = arith.addf %118, %119 : vector<16x1xf32>
    %121 = math.rsqrt %120 : vector<16x1xf32>
    %122 = vector.broadcast %121 : vector<16x1xf32> to vector<16x32xf32>
    %123 = arith.mulf %113, %122 : vector<16x32xf32>
    %124 = vector.broadcast %9 : vector<1x32xf32> to vector<16x32xf32>
    %125 = arith.mulf %123, %124 : vector<16x32xf32>
    %126 = vector.broadcast %10 : vector<1x32xf32> to vector<16x32xf32>
    %127 = arith.addf %125, %126 : vector<16x32xf32>
    %cst_36 = arith.constant dense<0.000000e+00> : vector<16x64xf32>
    %128 = tpu.matmul %127, %3, %cst_36 {dimension_numbers = #tpu.dot_dimension_numbers<[1], [0], [0], [1], [0, 0, 1, 1], [], []>} : vector<16x32xf32>, vector<32x64xf32>, vector<16x64xf32> -> vector<16x64xf32>
    %129 = vector.broadcast %4 : vector<1x64xf32> to vector<16x64xf32>
    %130 = arith.addf %128, %129 : vector<16x64xf32>
    %cst_37 = arith.constant 0.000000e+00 : f32
    %131 = vector.broadcast %cst_37 : f32 to vector<16x64xf32>
    %132 = arith.maximumf %130, %131 : vector<16x64xf32>
    %cst_38 = arith.constant dense<0.000000e+00> : vector<16x32xf32>
    %133 = tpu.matmul %132, %5, %cst_38 {dimension_numbers = #tpu.dot_dimension_numbers<[1], [0], [0], [1], [0, 0, 1, 1], [], []>} : vector<16x64xf32>, vector<64x32xf32>, vector<16x32xf32> -> vector<16x32xf32>
    %134 = vector.broadcast %8 : vector<1x32xf32> to vector<16x32xf32>
    %135 = arith.addf %133, %134 : vector<16x32xf32>
    %136 = arith.addf %127, %135 : vector<16x32xf32>
    %cst_39 = arith.constant dense<0.000000e+00> : vector<16xf32>
    %137 = vector.multi_reduction <add>, %136, %cst_39 [1] : vector<16x32xf32> to vector<16xf32>
    %138 = vector.shape_cast %137 : vector<16xf32> to vector<16x1xf32>
    %cst_40 = arith.constant 3.200000e+01 : f32
    %139 = vector.broadcast %cst_40 : f32 to vector<16x1xf32>
    %140 = arith.divf %138, %139 : vector<16x1xf32>
    %141 = vector.broadcast %140 : vector<16x1xf32> to vector<16x32xf32>
    %142 = arith.subf %136, %141 : vector<16x32xf32>
    %143 = arith.mulf %142, %142 : vector<16x32xf32>
    %cst_41 = arith.constant dense<0.000000e+00> : vector<16xf32>
    %144 = vector.multi_reduction <add>, %143, %cst_41 [1] : vector<16x32xf32> to vector<16xf32>
    %145 = vector.shape_cast %144 : vector<16xf32> to vector<16x1xf32>
    %cst_42 = arith.constant 3.200000e+01 : f32
    %146 = vector.broadcast %cst_42 : f32 to vector<16x1xf32>
    %147 = arith.divf %145, %146 : vector<16x1xf32>
    %cst_43 = arith.constant 9.99999974E-6 : f32
    %148 = vector.broadcast %cst_43 : f32 to vector<16x1xf32>
    %149 = arith.addf %147, %148 : vector<16x1xf32>
    %150 = math.rsqrt %149 : vector<16x1xf32>
    %151 = vector.broadcast %150 : vector<16x1xf32> to vector<16x32xf32>
    %152 = arith.mulf %142, %151 : vector<16x32xf32>
    %153 = vector.broadcast %11 : vector<1x32xf32> to vector<16x32xf32>
    %154 = arith.mulf %152, %153 : vector<16x32xf32>
    %155 = vector.broadcast %12 : vector<1x32xf32> to vector<16x32xf32>
    %156 = arith.addf %154, %155 : vector<16x32xf32>
    %c0_44 = arith.constant 0 : index
    %c0_45 = arith.constant 0 : index
    %157 = vector.load %arg3[%c0_44, %c0_45] : memref<16x32xf32, #tpu.memory_space<vmem>>, vector<16x32xf32>
    tpu.vector_store %arg3[%c0_44, %c0_45], %156 {strides = array<i32>} : memref<16x32xf32, #tpu.memory_space<vmem>>, vector<16x32xf32>,
    return
  }
}

</mosaic_0001>

<bundles_post_ra>
// kernel: transformer_encoder_layer.1
= control target key start
LH: loop header
LB: loop body
LE: loop exit
PB: predicated region body
PF: predicated region fallthrough
CT: control target
= control target key end

     0   :  { %vm49_vm0 = vcmask 261120   ;;  %s1942_s0 = inlined_call_operand.vmem [shape: f32[16,32], index: 0, kind: input, shape index: {}]   ;;  %s1943_s1 = inlined_call_operand.vmem [shape: f32[33,96], index: 1, kind: input, shape index: {}]   ;;  %s1944_s2 = inlined_call_operand.vmem [shape: f32[135,64], index: 2, kind: input, shape index: {}]   ;;  %s1945_s3 = inlined_call_operand.hbm [shape: f32[16,32], index: 3, kind: output, shape index: {}]  }
   0x1   :  { %v20_v0 = vld [vmem:[%s1943_s1 + $0x18] sm:$0xff]  ;;  %v19_v1 = vld [vmem:[%s1943_s1 + $0x10] sm:$0xff]  ;;  %v1693_v2 = vld [vmem:[%s1942_s0] sm:$0xff] }
   0x2   :  { %1474 = vmatprep.subr.mxu1 %v20_v0  ;;  %v18_v3 = vld [vmem:[%s1943_s1 + $0x8] sm:$0xff]  ;;  %1482 = vmatprep.mubr.msk.f32.mxu1 %vm49_vm0, %v1693_v2 }
   0x3   :  { %1475 = vmatpush3.msra.mxu1 %v20_v0 }
   0x4   :  { %8 = vsyncpa [#allocation3], 0  ;;  %1476 = vmatprep.subr.mxu1 %v19_v1  ;;  %v17_v4 = vld [vmem:[%s1943_s1] sm:$0xff]  ;;  %v1706_v5 = vld [vmem:[%s1942_s0 + $0x8] sm:$0xff]  ;;  %vm149_vm1 = vcmask 64512   ;;  %s1654_s26 = smov 112   ;;  %v494_v25 = vlaneseq }
   0x5   :  { %1477 = vmatpush3.msra.mxu1 %v19_v1  ;;  %v1374_v6 = vld [vmem:[%s1943_s1 + $0x20] ss:$0 sm:$0xff]  ;;  %s1655_s0 = smov 120   ;;  %s1656_s27 = smov 104   ;;  %vm549_vm3 = vcmask 130048   ;;  %vm1014_vm5 = vcmask 195584  }
   0x6   :  { %1478 = vmatprep.subr.mxu1 %v18_v3  ;;  %s1657_s1 = smov 96   ;;  %v495_v26 = vshrl.u32 %v494_v25, 7  ;;  %v522_v28 = vand.u32 127, %v494_v25  ;;  %s1658_s28 = smov 64   ;;  %vm1234_vm6 = vcmask 523264  }
   0x7   :  { %1479 = vmatpush3.msra.mxu1 %v18_v3  ;;  %s1659_s10 = smov 8   ;;  %s1660_s11 = smov 16  }
   0x8   :  { %1480 = vmatprep.subr.mxu1 %v17_v4  ;;  %v496_v27 = vadd.s32 8, %v495_v26  ;;  %v527_v30 = vand.u32 1, %v522_v28  ;;  %v501_v31 = vand.u32 1, %v495_v26  ;;  %s1661_s12 = smov 24   ;;  %s1662_s23 = smov [#allocation2]  }
   0x9   :  { %1481 = vmatpush3.msra.mxu1 %v17_v4  ;;  %s1363_s24 = sshll.u32 %s1662_s23, 4  ;;  %s1364_s24 = int_to_ptr.vmem [resolvable:$true] %s1363_s24 }
   0xa   :  { %1483 = vmatmul.mubr.msk.f32.vlgmr.msra.gmra.mxu1 %vm49_vm0, %v1706_v5  ;;  %v508_v29 = vand.u32 1, %v496_v27  ;;  %vm1779_vm4 = vcmp.eq.s32.totalorder %v501_v31, %v527_v30  ;;  %s1632_s25 = scalar_lea.vmem %s1364_s24, 256  ;;  %p1637_p1 = scmp.lt.s32.totalorder %s1364_s24, %s1364_s24 }
   0xb   :  { %p1633_p0 = scmp.ne.s32.totalorder %s1364_s24, %s1632_s25  ;;  %p1638_p2 = scmp.lt.s32.totalorder %s1632_s25, %s1632_s25 }
   0xc   :  { %vm1775_vm2 = vcmp.eq.s32.totalorder %v508_v29, %v527_v30 }
   0xd   :  { %p1639_p3 = por %p1638_p2, %p1637_p1 }
   0xf   :  { %p1640_p4 = pnand %p1639_p3, %p1633_p0 }
  0xca   :  { %v1484_v7 = vpop.f32.mrf.mxu1 }
  0xcb   :  { %v1713_v8 = vadd.f32 %v1484_v7, %v1374_v6 }
  0xcc   :  { %v122_v9 = vpop.f32.mrf.mxu1 }
  0xcd   :  { %v1715_v10 = vadd.f32 %v1374_v6, %v122_v9  ;;  %139 = vrot.lane.b32.xlu1 %v1713_v8, %s1654_s26  ;;  %135 = vrot.lane.b32.xlu0 %v1713_v8, %s1655_s0 }
  0xcf   :  { %1489 = vmatprep.mubr.msk.f32.mxu1 %vm149_vm1, %v1715_v10 }
  0xd1   :  { %143 = vrot.lane.b32.xlu1 %v1713_v8, %s1656_s27  ;;  %133 = vrot.lane.b32.xlu0 %v1715_v10, %s1655_s0 }
  0xd5   :  { %141 = vrot.lane.b32.xlu1 %v1715_v10, %s1656_s27  ;;  %137 = vrot.lane.b32.xlu0 %v1715_v10, %s1654_s26 }
  0xd9   :  { %147 = vrot.lane.b32.xlu0 %v1713_v8, %s1657_s1 }
  0xdd   :  { %145 = vrot.lane.b32.xlu0 %v1715_v10, %s1657_s1 }
 0x13f   :  { %v1727_v11 = vpop.permute.xlu1 %139  ;;  %v1729_v12 = vpop.permute.xlu0 %135 }
 0x140   :  { %235 = vrot.lane.b32.xlu1 %v1729_v12, %s1657_s1  ;;  %322 = vrot.lane.b32.xlu0 %v1727_v11, %s1657_s1 }
 0x143   :  { %v1733_v13 = vpop.permute.xlu0 %133  ;;  %v1738_v14 = vpop.permute.xlu1 %143 }
 0x144   :  { %1496 = vmatprep.mubr.msk.f32.mxu0 %vm149_vm1, %v1733_v13  ;;  %233 = vrot.lane.b32.xlu1 %v1733_v13, %s1657_s1 }
 0x147   :  { %v1740_v15 = vpop.permute.xlu0 %137  ;;  %v1744_v16 = vpop.permute.xlu1 %141 }
 0x148   :  { %409 = vrot.lane.b32.xlu1 %v1738_v14, %s1657_s1  ;;  %320 = vrot.lane.b32.xlu0 %v1740_v15, %s1657_s1 }
 0x14b   :  { %v148_v17 = vpop.permute.xlu0 %147 }
 0x14c   :  { %407 = vrot.lane.b32.xlu1 %v1744_v16, %s1657_s1  ;;  %1485 = vmatprep.subr.msk.mxu1 %vm149_vm1, %v148_v17 }
 0x14d   :  { %1486 = vmatpush3.xpose.msk.msra.mxu1 %vm149_vm1, %v148_v17 }
 0x14f   :  { %v146_v18 = vpop.permute.xlu0 %145 }
 0x150   :  { %1487 = vmatprep.subr.msk.mxu1 %vm149_vm1, %v146_v18 }
 0x151   :  { %1488 = vmatpush3.xpose.msk.msra.mxu1 %vm149_vm1, %v146_v18 }
 0x154   :  { %1490 = vmatmul.mubr.msk.f32.vlgmr.msra.gmra.mxu1 %vm149_vm1, %v1713_v8 }
 0x155   :  { %1503 = vmatprep.mubr.msk.f32.mxu1 %vm149_vm1, %v1740_v15 }
 0x1b2   :  { %v236_v19 = vpop.permute.xlu1 %235  ;;  %v323_v20 = vpop.permute.xlu0 %322 }
 0x1b3   :  { %1492 = vmatprep.subr.msk.mxu0 %vm149_vm1, %v236_v19  ;;  %1499 = vmatprep.subr.msk.mxu1 %vm149_vm1, %v323_v20 }
 0x1b4   :  { %1493 = vmatpush3.xpose.msk.msra.mxu0 %vm149_vm1, %v236_v19  ;;  %1500 = vmatpush3.xpose.msk.msra.mxu1 %vm149_vm1, %v323_v20 }
 0x1b6   :  { %v234_v21 = vpop.permute.xlu1 %233 }
 0x1b7   :  { %1494 = vmatprep.subr.msk.mxu0 %vm149_vm1, %v234_v21 }
 0x1b8   :  { %1495 = vmatpush3.xpose.msk.msra.mxu0 %vm149_vm1, %v234_v21 }
 0x1ba   :  { %v410_v22 = vpop.permute.xlu1 %409  ;;  %v321_v23 = vpop.permute.xlu0 %320 }
 0x1bb   :  { %1497 = vmatmul.mubr.msk.f32.vlgmr.msra.gmra.mxu0 %vm149_vm1, %v1729_v12  ;;  %1501 = vmatprep.subr.msk.mxu1 %vm149_vm1, %v321_v23 }
 0x1bc   :  { %1506 = vmatprep.subr.msk.mxu0 %vm149_vm1, %v410_v22  ;;  %1502 = vmatpush3.xpose.msk.msra.mxu1 %vm149_vm1, %v321_v23 }
 0x1bd   :  { %1507 = vmatpush3.xpose.msk.msra.mxu0 %vm149_vm1, %v410_v22  ;;  %1510 = vmatprep.mubr.msk.f32.mxu0 %vm149_vm1, %v1744_v16 }
 0x1be   :  { %v408_v24 = vpop.permute.xlu1 %407 }
 0x1bf   :  { %1504 = vmatmul.mubr.msk.f32.vlgmr.msra.gmra.mxu1 %vm149_vm1, %v1727_v11  ;;  %1508 = vmatprep.subr.msk.mxu0 %vm149_vm1, %v408_v24 }
 0x1c1   :  { %1509 = vmatpush3.xpose.msk.msra.mxu0 %vm149_vm1, %v408_v24 }
 0x1c4   :  { %1511 = vmatmul.mubr.msk.f32.vlgmr.msra.gmra.mxu0 %vm149_vm1, %v1738_v14 }
 0x214   :  { %v1491_v33 = vpop.f32.mrf.mxu1 }
 0x215   :  { %v542_v35 = vsel %vm1775_vm2, %v1491_v33, -1e+30 }
 0x216   :  { %v224_v36 = vpop.f32.mrf.mxu1  ;;  %v553_v37 = vsel %vm549_vm3, %v542_v35, -inf }
 0x217   :  { %v541_v38 = vsel %vm1779_vm4, %v224_v36, -1e+30  ;;  %554 = vmax.xlane.f32.xlu1 %v553_v37 }
 0x218   :  { %v550_v39 = vsel %vm549_vm3, %v541_v38, -inf }
 0x219   :  { %551 = vmax.xlane.f32.xlu0 %v550_v39 }
 0x27b   :  { %v1498_v40 = vpop.f32.mrf.mxu0 }
 0x27c   :  { %v544_v41 = vsel %vm1775_vm2, %v1498_v40, -1e+30 }
 0x27d   :  { %v311_v42 = vpop.f32.mrf.mxu0  ;;  %v559_v43 = vsel %vm549_vm3, %v544_v41, -inf }
 0x27e   :  { %v543_v44 = vsel %vm1779_vm4, %v311_v42, -1e+30  ;;  %560 = vmax.xlane.f32.xlu0 %v559_v43 }
 0x27f   :  { %v1505_v45 = vpop.f32.mrf.mxu1  ;;  %v556_v47 = vsel %vm549_vm3, %v543_v44, -inf }
 0x280   :  { %v546_v48 = vsel %vm1775_vm2, %v1505_v45, -1e+30 }
 0x281   :  { %v398_v46 = vpop.f32.mrf.mxu1  ;;  %v565_v52 = vsel %vm549_vm3, %v546_v48, -inf }
 0x282   :  { %v545_v49 = vsel %vm1779_vm4, %v398_v46, -1e+30  ;;  %557 = vmax.xlane.f32.xlu0 %v556_v47 }
 0x283   :  { %v562_v50 = vsel %vm549_vm3, %v545_v49, -inf }
 0x284   :  { %v1512_v51 = vpop.f32.mrf.mxu0  ;;  %563 = vmax.xlane.f32.xlu1 %v562_v50 }
 0x285   :  { %v548_v53 = vsel %vm1775_vm2, %v1512_v51, -1e+30 }
 0x286   :  { %v485_v54 = vpop.f32.mrf.mxu0  ;;  %566 = vmax.xlane.f32.xlu0 %v565_v52  ;;  %v571_v57 = vsel %vm549_vm3, %v548_v53, -inf }
 0x287   :  { %v547_v55 = vsel %vm1779_vm4, %v485_v54, -1e+30 }
 0x288   :  { %v568_v56 = vsel %vm549_vm3, %v547_v55, -inf }
 0x289   :  { %569 = vmax.xlane.f32.xlu1 %v568_v56 }
 0x28a   :  { %572 = vmax.xlane.f32.xlu0 %v571_v57 }
 0x29a   :  { %640 = vrot.lane.b32.xlu1 %v1713_v8, %s1658_s28 }
 0x29e   :  { %727 = vrot.lane.b32.xlu1 %v1729_v12, %s1658_s28 }
 0x2a0   :  { %638 = vrot.lane.b32.xlu0 %v1715_v10, %s1658_s28  ;;  %v555_v58 = vpop.xlane.xlu1 %554 }
 0x2a1   :  { %v575_v59 = vsub.f32 %v542_v35, %v555_v58 }
 0x2a2   :  { %725 = vrot.lane.b32.xlu1 %v1733_v13, %s1658_s28  ;;  %v552_v61 = vpop.xlane.xlu0 %551 }
 0x2a3   :  { %v584_v60 = vmul.f32 1.442695, %v575_v59  ;;  %v574_v62 = vsub.f32 %v541_v38, %v552_v61 }
 0x2a4   :  { %814 = vrot.lane.b32.xlu0 %v1727_v11, %s1658_s28 }
 0x2a5   :  { %1592 = vpow2.f32 %v584_v60  ;;  %v582_v63 = vmul.f32 1.442695, %v574_v62 }
 0x2a6   :  { %901 = vrot.lane.b32.xlu1 %v1738_v14, %s1658_s28 }
 0x2a7   :  { %1594 = vpow2.f32 %v582_v63 }
 0x2b2   :  { %v1819_v0 = vpop.eup %1592 }
 0x2b3   :  { %v601_v1 = vsel %vm549_vm3, %v1819_v0, 0.0 }
 0x2b4   :  { %v1823_v3 = vpop.eup %1594 }
 0x2b5   :  { %v598_v4 = vsel %vm549_vm3, %v1823_v3, 0.0 }
 0x2c3   :  { %602 = vadd.xlane.f32.xlu0 %v601_v1 }
 0x2ca   :  { %599 = vadd.xlane.f32.xlu1 %v598_v4 }
 0x307   :  { %v561_v6 = vpop.xlane.xlu0 %560 }
 0x308   :  { %v577_v7 = vsub.f32 %v544_v41, %v561_v6  ;;  %v38_v6 = vld [vmem:[%s1944_s2 + $0x79] sm:$0xff] }
 0x30a   :  { %v588_v8 = vmul.f32 1.442695, %v577_v7 }
 0x30b   :  { %v558_v9 = vpop.xlane.xlu0 %557 }
 0x30c   :  { %1596 = vpow2.f32 %v588_v8  ;;  %v576_v10 = vsub.f32 %v543_v44, %v558_v9  ;;  %v37_v8 = vld [vmem:[%s1944_s2 + $0x71] sm:$0xff]  ;;  %v36_v9 = vld [vmem:[%s1944_s2 + $0x69] sm:$0xff] }
 0x30d   :  { %v564_v11 = vpop.xlane.xlu1 %563 }
 0x30e   :  { %v586_v12 = vmul.f32 1.442695, %v576_v10  ;;  %v578_v13 = vsub.f32 %v545_v49, %v564_v11  ;;  %v35_v11 = vld [vmem:[%s1944_s2 + $0x61] sm:$0xff] }
 0x30f   :  { %v567_v14 = vpop.xlane.xlu0 %566 }
 0x310   :  { %1598 = vpow2.f32 %v586_v12  ;;  %v590_v17 = vmul.f32 1.442695, %v578_v13  ;;  %v579_v18 = vsub.f32 %v546_v48, %v567_v14 }
 0x312   :  { %1600 = vpow2.f32 %v590_v17  ;;  %v592_v19 = vmul.f32 1.442695, %v579_v18  ;;  %v570_v20 = vpop.xlane.xlu1 %569 }
 0x313   :  { %v580_v21 = vsub.f32 %v547_v55, %v570_v20  ;;  %v573_v22 = vpop.xlane.xlu0 %572 }
 0x314   :  { %1602 = vpow2.f32 %v592_v19  ;;  %v581_v23 = vsub.f32 %v548_v53, %v573_v22 }
 0x315   :  { %v594_v24 = vmul.f32 1.442695, %v580_v21 }
 0x316   :  { %v596_v25 = vmul.f32 1.442695, %v581_v23  ;;  %v641_v26 = vpop.permute.xlu1 %640 }
 0x317   :  { %1604 = vpow2.f32 %v594_v24  ;;  %1513 = vmatprep.subr.mxu1 %v641_v26  ;;  %v639_v27 = vpop.permute.xlu0 %638 }
 0x318   :  { %1606 = vpow2.f32 %v596_v25  ;;  %1514 = vmatpush3.msra.mxu1 %v641_v26 }
 0x319   :  { %v1597_v28 = vpop.eup %1596  ;;  %1515 = vmatprep.subr.mxu1 %v639_v27 }
 0x31a   :  { %1516 = vmatpush3.msra.mxu1 %v639_v27  ;;  %v728_v29 = vpop.permute.xlu1 %727  ;;  %v607_v30 = vsel %vm549_vm3, %v1597_v28, 0.0 }
 0x31b   :  { %1520 = vmatprep.subr.mxu1 %v728_v29  ;;  %608 = vadd.xlane.f32.xlu0 %v607_v30  ;;  %v815_v31 = vpop.permute.xlu0 %814 }
 0x31c   :  { %1527 = vmatprep.subr.mxu0 %v815_v31 }
 0x31d   :  { %v1599_v32 = vpop.eup %1598  ;;  %1528 = vmatpush3.msra.mxu0 %v815_v31 }
 0x31e   :  { %v604_v33 = vsel %vm549_vm3, %v1599_v32, 0.0  ;;  %v726_v42 = vpop.permute.xlu1 %725 }
 0x31f   :  { %v1601_v34 = vpop.eup %1600  ;;  %605 = vadd.xlane.f32.xlu1 %v604_v33 }
 0x320   :  { %v610_v37 = vsel %vm549_vm3, %v1601_v34, 0.0 }
 0x321   :  { %v1603_v35 = vpop.eup %1602 }
 0x322   :  { %v613_v36 = vsel %vm549_vm3, %v1603_v35, 0.0  ;;  %v902_v43 = vpop.permute.xlu1 %901 }
 0x323   :  { %614 = vadd.xlane.f32.xlu0 %v613_v36  ;;  %611 = vadd.xlane.f32.xlu1 %v610_v37 }
 0x324   :  { %v1605_v38 = vpop.eup %1604 }
 0x325   :  { %v1607_v39 = vpop.eup %1606  ;;  %v616_v41 = vsel %vm549_vm3, %v1605_v38, 0.0 }
 0x326   :  { %v619_v40 = vsel %vm549_vm3, %v1607_v39, 0.0 }
 0x327   :  { %620 = vadd.xlane.f32.xlu0 %v619_v40  ;;  %617 = vadd.xlane.f32.xlu1 %v616_v41 }
 0x338   :  { %899 = vrot.lane.b32.xlu1 %v1744_v16, %s1658_s28 }
 0x33d   :  { %812 = vrot.lane.b32.xlu0 %v1740_v15, %s1658_s28 }
 0x34c   :  { %v603_v44 = vpop.xlane.xlu0 %602 }
 0x34d   :  { %1608 = vrcp.f32 %v603_v44 }
 0x353   :  { %v600_v45 = vpop.xlane.xlu1 %599 }
 0x354   :  { %1610 = vrcp.f32 %v600_v45 }
 0x35a   :  { %v1609_v46 = vpop.eup %1608 }
 0x35b   :  { %v631_v49 = vmul.f32 %v1609_v46, %v1819_v0 }
 0x361   :  { %v1611_v47 = vpop.eup %1610 }
 0x362   :  { %v630_v48 = vmul.f32 %v1611_v47, %v1823_v3 }
 0x364   :  { %1517 = vmatprep.mubr.msk.f32.mxu1 %vm549_vm3, %v630_v48 }
 0x365   :  { %1518 = vmatmul.mubr.msk.f32.vlgmr.msra.gmra.mxu1 %vm549_vm3, %v631_v49 }
 0x366   :  { %1521 = vmatpush3.msra.mxu1 %v728_v29 }
 0x367   :  { %1522 = vmatprep.subr.mxu1 %v726_v42 }
 0x368   :  { %1523 = vmatpush3.msra.mxu1 %v726_v42 }
 0x369   :  { %1534 = vmatprep.subr.mxu1 %v902_v43 }
 0x3a4   :  { %v609_v15 = vpop.xlane.xlu0 %608 }
 0x3a5   :  { %1612 = vrcp.f32 %v609_v15  ;;  %v24_v15 = vld [vmem:[%s1944_s2 + $0x10] sm:$0xff] }
 0x3a8   :  { %v606_v16 = vpop.xlane.xlu1 %605 }
 0x3a9   :  { %1614 = vrcp.f32 %v606_v16  ;;  %v23_v16 = vld [vmem:[%s1944_s2 + $0x8] sm:$0xff] }
 0x3ac   :  { %v615_v50 = vpop.xlane.xlu0 %614  ;;  %v612_v51 = vpop.xlane.xlu1 %611 }
 0x3ad   :  { %1616 = vrcp.f32 %v615_v50  ;;  %v22_v50 = vld [vmem:[%s1944_s2] sm:$0xff] }
 0x3ae   :  { %1618 = vrcp.f32 %v612_v51  ;;  %v34_v51 = vld [vmem:[%s1944_s2 + $0x59] sm:$0xff] }
 0x3b0   :  { %v621_v52 = vpop.xlane.xlu0 %620  ;;  %v618_v53 = vpop.xlane.xlu1 %617 }
 0x3b1   :  { %1620 = vrcp.f32 %v621_v52  ;;  %v33_v52 = vld [vmem:[%s1944_s2 + $0x51] sm:$0xff] }
 0x3b2   :  { %1622 = vrcp.f32 %v618_v53  ;;  %v1613_v55 = vpop.eup %1612  ;;  %v32_v53 = vld [vmem:[%s1944_s2 + $0x49] sm:$0xff] }
 0x3b3   :  { %v633_v58 = vmul.f32 %v1613_v55, %v1597_v28 }
 0x3b4   :  { %v813_v54 = vpop.permute.xlu0 %812  ;;  %v900_v61 = vpop.permute.xlu1 %899 }
 0x3b5   :  { %1529 = vmatprep.subr.mxu0 %v813_v54 }
 0x3b6   :  { %v1615_v56 = vpop.eup %1614  ;;  %1530 = vmatpush3.msra.mxu0 %v813_v54  ;;  %v31_v54 = vld [vmem:[%s1944_s2 + $0x41] sm:$0xff] }
 0x3b7   :  { %v632_v57 = vmul.f32 %v1615_v56, %v1599_v32  ;;  %1541 = vmatprep.subr.mxu0 %v38_v6  ;;  %v1401_v32 = vld [vmem:[%s1944_s2 + $0x81] ss:$0 sm:$0xff] }
 0x3b9   :  { %1524 = vmatprep.mubr.msk.f32.mxu1 %vm549_vm3, %v632_v57 }
 0x3ba   :  { %v1617_v59 = vpop.eup %1616  ;;  %1525 = vmatmul.mubr.msk.f32.vlgmr.msra.gmra.mxu1 %vm549_vm3, %v633_v58 }
 0x3bb   :  { %v1619_v60 = vpop.eup %1618  ;;  %1535 = vmatpush3.msra.mxu1 %v902_v43  ;;  %v635_v62 = vmul.f32 %v1617_v59, %v1603_v35 }
 0x3bc   :  { %1536 = vmatprep.subr.mxu1 %v900_v61  ;;  %v634_v63 = vmul.f32 %v1619_v60, %v1601_v34 }
 0x3bd   :  { %1537 = vmatpush3.msra.mxu1 %v900_v61 }
 0x3be   :  { %v1621_v0 = vpop.eup %1620  ;;  %1531 = vmatprep.mubr.msk.f32.mxu0 %vm549_vm3, %v634_v63 }
 0x3bf   :  { %v1623_v1 = vpop.eup %1622  ;;  %1532 = vmatmul.mubr.msk.f32.vlgmr.msra.gmra.mxu0 %vm549_vm3, %v635_v62  ;;  %v637_v3 = vmul.f32 %v1621_v0, %v1607_v39  ;;  %v1404_v62 = vld [vmem:[%s1944_s2 + $0x83] ss:$0 sm:$0xff]  ;;  %v1405_v0 = vld [vmem:[%s1944_s2 + $0x84] ss:$0 sm:$0xff] }
 0x3c0   :  { %v636_v4 = vmul.f32 %v1623_v1, %v1605_v38  ;;  %1542 = vmatpush3.msra.mxu0 %v38_v6 }
 0x3c1   :  { %1543 = vmatprep.subr.mxu0 %v37_v8 }
 0x3c2   :  { %1538 = vmatprep.mubr.msk.f32.mxu1 %vm549_vm3, %v636_v4  ;;  %1544 = vmatpush3.msra.mxu0 %v37_v8 }
 0x3c3   :  { %1539 = vmatmul.mubr.msk.f32.vlgmr.msra.gmra.mxu1 %vm549_vm3, %v637_v3  ;;  %1545 = vmatprep.subr.mxu0 %v36_v9 }
 0x3c4   :  { %1546 = vmatpush3.msra.mxu0 %v36_v9  ;;  %v30_v9 = vld [vmem:[%s1944_s2 + $0x39] sm:$0xff] }
 0x3c5   :  { %1547 = vmatprep.subr.mxu0 %v35_v11 }
 0x3c6   :  { %1548 = vmatpush3.msra.mxu0 %v35_v11  ;;  %v28_v11 = vld [vmem:[%s1944_s2 + $0x29] sm:$0xff] }
 0x3c7   :  { %1563 = vmatprep.subr.mxu0 %v34_v51 }
 0x425   :  { %v1519_v7 = vpop.f32.mrf.mxu1 }
 0x427   :  { %v716_v10 = vpop.f32.mrf.mxu1 }
 0x47a   :  { %v1526_v12 = vpop.f32.mrf.mxu1 }
 0x47b   :  { %990 = vrot.lane.b32.xlu1 %v1526_v12, %s1659_s10  ;;  %v27_v12 = vld [vmem:[%s1944_s2 + $0x21] sm:$0xff] }
 0x47c   :  { %v803_v13 = vpop.f32.mrf.mxu1 }
 0x47d   :  { %988 = vrot.lane.b32.xlu0 %v803_v13, %s1659_s10  ;;  %v1406_v13 = vld [vmem:[%s1944_s2 + $0x20] ss:$0 sm:$0xff] }
 0x47f   :  { %v1533_v14 = vpop.f32.mrf.mxu0 }
 0x480   :  { %998 = vrot.lane.b32.xlu1 %v1533_v14, %s1660_s11 }
 0x481   :  { %v890_v17 = vpop.f32.mrf.mxu0 }
 0x482   :  { %996 = vrot.lane.b32.xlu0 %v890_v17, %s1660_s11 }
 0x483   :  { %v1540_v18 = vpop.f32.mrf.mxu1 }
 0x484   :  { %1006 = vrot.lane.b32.xlu1 %v1540_v18, %s1661_s12 }
 0x485   :  { %v977_v19 = vpop.f32.mrf.mxu1 }
 0x486   :  { %1004 = vrot.lane.b32.xlu0 %v977_v19, %s1661_s12 }
 0x4ed   :  { %v991_v20 = vpop.permute.xlu1 %990 }
 0x4ee   :  { %v1011_v26 = vsel %vm149_vm1, %v1519_v7, %v991_v20 }
 0x4ef   :  { %v989_v21 = vpop.permute.xlu0 %988 }
 0x4f0   :  { %v1010_v24 = vsel %vm149_vm1, %v716_v10, %v989_v21  ;;  %v29_v10 = vld [vmem:[%s1944_s2 + $0x31] sm:$0xff] }
 0x4f2   :  { %v999_v22 = vpop.permute.xlu1 %998 }
 0x4f3   :  { %v1013_v29 = vsel %vm549_vm3, %v1011_v26, %v999_v22  ;;  %v1409_v22 = vld [vmem:[%s1944_s2 + $0x82] ss:$0 sm:$0xff] }
 0x4f4   :  { %v997_v23 = vpop.permute.xlu0 %996 }
 0x4f5   :  { %v1012_v27 = vsel %vm549_vm3, %v1010_v24, %v997_v23 }
 0x4f6   :  { %v1007_v25 = vpop.permute.xlu1 %1006 }
 0x4f7   :  { %v1016_v31 = vsel %vm1014_vm5, %v1013_v29, %v1007_v25 }
 0x4f8   :  { %v1005_v28 = vpop.permute.xlu0 %1004 }
 0x4f9   :  { %v1015_v30 = vsel %vm1014_vm5, %v1012_v27, %v1005_v28 }
 0x4fa   :  { %1549 = vmatprep.mubr.msk.f32.mxu0 %vm49_vm0, %v1015_v30 }
 0x4fb   :  { %1550 = vmatmul.mubr.msk.f32.vlgmr.msra.gmra.mxu0 %vm49_vm0, %v1016_v31 }
 0x4fc   :  { %1564 = vmatpush3.msra.mxu0 %v34_v51 }
 0x4fd   :  { %1565 = vmatprep.subr.mxu0 %v33_v52 }
 0x4fe   :  { %1566 = vmatpush3.msra.mxu0 %v33_v52 }
 0x4ff   :  { %1567 = vmatprep.subr.mxu0 %v32_v53 }
 0x500   :  { %1568 = vmatpush3.msra.mxu0 %v32_v53 }
 0x501   :  { %1569 = vmatprep.subr.mxu0 %v31_v54 }
 0x502   :  { %1570 = vmatpush3.msra.mxu0 %v31_v54 }
 0x503   :  { %1571 = vmatprep.subr.mxu0 %v30_v9 }
 0x504   :  { %1572 = vmatpush3.msra.mxu0 %v30_v9 }
 0x505   :  { %1573 = vmatprep.subr.mxu0 %v29_v10 }
 0x506   :  { %1574 = vmatpush3.msra.mxu0 %v29_v10 }
 0x507   :  { %1575 = vmatprep.subr.mxu0 %v28_v11 }
 0x508   :  { %1576 = vmatpush3.msra.mxu0 %v28_v11 }
 0x509   :  { %1577 = vmatprep.subr.mxu0 %v27_v12 }
 0x50a   :  { %1578 = vmatpush3.msra.mxu0 %v27_v12 }
 0x5bb   :  { %v1551_v33 = vpop.f32.mrf.mxu0 }
 0x5bc   :  { %v1099_v34 = vadd.f32 %v1551_v33, %v1401_v32 }
 0x5bd   :  { %v1093_v35 = vpop.f32.mrf.mxu0 }
 0x5be   :  { %v1094_v36 = vadd.f32 %v1401_v32, %v1093_v35  ;;  %v1103_v37 = vadd.f32 %v1099_v34, %v1706_v5 }
 0x5c0   :  { %v1107_v38 = vsel %vm49_vm0, %v1103_v37, 0.0  ;;  %v1102_v39 = vadd.f32 %v1094_v36, %v1693_v2  ;;  %v25_v2 = vld [vmem:[%s1944_s2 + $0x18] sm:$0xff] }
 0x5c1   :  { %1108 = vadd.xlane.f32.xlu1 %v1107_v38  ;;  %1552 = vmatprep.subr.mxu1 %v25_v2 }
 0x5c2   :  { %v1104_v40 = vsel %vm49_vm0, %v1102_v39, 0.0  ;;  %1553 = vmatpush3.msra.mxu1 %v25_v2  ;;  %v1413_v2 = vld [vmem:[%s1944_s2 + $0x86] ss:$0 sm:$0xff] }
 0x5c3   :  { %1105 = vadd.xlane.f32.xlu0 %v1104_v40  ;;  %1554 = vmatprep.subr.mxu1 %v24_v15 }
 0x5c4   :  { %1555 = vmatpush3.msra.mxu1 %v24_v15 }
 0x5c5   :  { %1556 = vmatprep.subr.mxu1 %v23_v16 }
 0x5c6   :  { %1557 = vmatpush3.msra.mxu1 %v23_v16 }
 0x5c7   :  { %1558 = vmatprep.subr.mxu1 %v22_v50 }
 0x5c8   :  { %1559 = vmatpush3.msra.mxu1 %v22_v50 }
 0x64a   :  { %v1109_v41 = vpop.xlane.xlu1 %1108 }
 0x64b   :  { %v1112_v42 = vmul.f32 0.03125, %v1109_v41 }
 0x64c   :  { %v1106_v43 = vpop.xlane.xlu0 %1105 }
 0x64d   :  { %v1111_v44 = vmul.f32 0.03125, %v1106_v43  ;;  %v1114_v45 = vsub.f32 %v1103_v37, %v1112_v42 }
 0x64f   :  { %v1113_v46 = vsub.f32 %v1102_v39, %v1111_v44  ;;  %v1116_v49 = vmul.f32 %v1114_v45, %v1114_v45 }
 0x651   :  { %v1115_v47 = vmul.f32 %v1113_v46, %v1113_v46  ;;  %v1120_v5 = vsel %vm49_vm0, %v1116_v49, 0.0 }
 0x653   :  { %v1117_v48 = vsel %vm49_vm0, %v1115_v47, 0.0 }
 0x654   :  { %1118 = vadd.xlane.f32.xlu0 %v1117_v48  ;;  %v1412_v48 = vld [vmem:[%s1944_s2 + $0x85] ss:$0 sm:$0xff] }
 0x658   :  { %1121 = vadd.xlane.f32.xlu0 %v1120_v5 }
 0x6dd   :  { %v1119_v55 = vpop.xlane.xlu0 %1118 }
 0x6de   :  { %v1123_v56 = vmul.f32 0.03125, %v1119_v55 }
 0x6e0   :  { %v1125_v57 = vadd.f32 1e-05, %v1123_v56 }
 0x6e1   :  { %v1122_v58 = vpop.xlane.xlu0 %1121 }
 0x6e2   :  { %1624 = vrsqrt.f32 %v1125_v57  ;;  %v1124_v59 = vmul.f32 0.03125, %v1122_v58 }
 0x6e4   :  { %v1126_v60 = vadd.f32 1e-05, %v1124_v59 }
 0x6e6   :  { %1626 = vrsqrt.f32 %v1126_v60 }
 0x6ef   :  { %v1625_v61 = vpop.eup %1624 }
 0x6f0   :  { %v1129_v63 = vmul.f32 %v1625_v61, %v1113_v46 }
 0x6f2   :  { %v1135_v1 = vmul.f32 %v1404_v62, %v1129_v63 }
 0x6f3   :  { %v1627_v3 = vpop.eup %1626 }
 0x6f4   :  { %v1130_v4 = vmul.f32 %v1627_v3, %v1114_v45  ;;  %v1141_v6 = vadd.f32 %v1405_v0, %v1135_v1 }
 0x6f6   :  { %v1136_v7 = vmul.f32 %v1404_v62, %v1130_v4  ;;  %1560 = vmatprep.mubr.msk.f32.mxu1 %vm49_vm0, %v1141_v6 }
 0x6f8   :  { %v1142_v8 = vadd.f32 %v1405_v0, %v1136_v7 }
 0x6fa   :  { %1561 = vmatmul.mubr.msk.f32.vlgmr.msra.gmra.mxu1 %vm49_vm0, %v1142_v8 }
 0x7ba   :  { %v1562_v14 = vpop.f32.mrf.mxu1 }
 0x7bb   :  { %v1225_v17 = vadd.f32 %v1562_v14, %v1406_v13 }
 0x7bc   :  { %v1219_v18 = vpop.f32.mrf.mxu1 }
 0x7bd   :  { %v1220_v19 = vadd.f32 %v1406_v13, %v1219_v18  ;;  %v1229_v21 = vmax.f32 %v1225_v17, 0.0 }
 0x7bf   :  { %v1228_v20 = vmax.f32 %v1220_v19, 0.0 }
 0x7c1   :  { %1579 = vmatprep.mubr.msk.f32.mxu0 %vm1234_vm6, %v1228_v20 }
 0x7c2   :  { %1580 = vmatmul.mubr.msk.f32.vlgmr.msra.gmra.mxu0 %vm1234_vm6, %v1229_v21 }
 0x882   :  { %v1581_v23 = vpop.f32.mrf.mxu0 }
 0x883   :  { %v1313_v24 = vadd.f32 %v1581_v23, %v1409_v22 }
 0x884   :  { %v1307_v25 = vpop.f32.mrf.mxu0 }
 0x885   :  { %v1308_v26 = vadd.f32 %v1409_v22, %v1307_v25  ;;  %v1317_v27 = vadd.f32 %v1313_v24, %v1142_v8 }
 0x887   :  { %v1321_v28 = vsel %vm49_vm0, %v1317_v27, 0.0  ;;  %v1316_v29 = vadd.f32 %v1308_v26, %v1141_v6 }
 0x888   :  { %1322 = vadd.xlane.f32.xlu0 %v1321_v28 }
 0x889   :  { %v1318_v30 = vsel %vm49_vm0, %v1316_v29, 0.0 }
 0x88a   :  { %1319 = vadd.xlane.f32.xlu1 %v1318_v30 }
 0x911   :  { %v1323_v31 = vpop.xlane.xlu0 %1322 }
 0x912   :  { %v1325_v32 = vmul.f32 0.03125, %v1323_v31 }
 0x913   :  { %v1320_v33 = vpop.xlane.xlu1 %1319 }
 0x914   :  { %v1327_v34 = vsub.f32 %v1317_v27, %v1325_v32  ;;  %v1324_v35 = vmul.f32 0.03125, %v1320_v33 }
 0x916   :  { %v1326_v36 = vsub.f32 %v1316_v29, %v1324_v35  ;;  %v1329_v37 = vmul.f32 %v1327_v34, %v1327_v34 }
 0x918   :  { %v1333_v38 = vsel %vm49_vm0, %v1329_v37, 0.0  ;;  %v1328_v39 = vmul.f32 %v1326_v36, %v1326_v36 }
 0x919   :  { %1334 = vadd.xlane.f32.xlu0 %v1333_v38 }
 0x91a   :  { %v1330_v40 = vsel %vm49_vm0, %v1328_v39, 0.0 }
 0x91b   :  { %1331 = vadd.xlane.f32.xlu1 %v1330_v40 }
 0x9a2   :  { %v1335_v41 = vpop.xlane.xlu0 %1334 }
 0x9a3   :  { %v1337_v42 = vmul.f32 0.03125, %v1335_v41 }
 0x9a4   :  { %v1332_v43 = vpop.xlane.xlu1 %1331 }
 0x9a5   :  { %v1339_v44 = vadd.f32 1e-05, %v1337_v42  ;;  %v1336_v45 = vmul.f32 0.03125, %v1332_v43 }
 0x9a7   :  { %1628 = vrsqrt.f32 %v1339_v44  ;;  %v1338_v46 = vadd.f32 1e-05, %v1336_v45 }
 0x9a9   :  { %1630 = vrsqrt.f32 %v1338_v46 }
 0x9b4   :  { %v1629_v47 = vpop.eup %1628 }
 0x9b5   :  { %v1343_v49 = vmul.f32 %v1629_v47, %v1327_v34 }
 0x9b6   :  { %v1631_v5 = vpop.eup %1630 }
 0x9b7   :  { %v1342_v15 = vmul.f32 %v1631_v5, %v1326_v36  ;;  %v1349_v16 = vmul.f32 %v1412_v48, %v1343_v49 }
 0x9b9   :  { %v1348_v50 = vmul.f32 %v1412_v48, %v1342_v15  ;;  %v1355_v51 = vadd.f32 %v1413_v2, %v1349_v16 }
 0x9bb   :  { %v1354_v52 = vadd.f32 %v1413_v2, %v1348_v50  ;;  %1357 = vst.msk [vmem:[#allocation2 + $0x8] sm:$0xff] %vm49_vm0, %v1355_v51 }
 0x9bd   :  { %1356 = vst.msk [vmem:[#allocation2] sm:$0xff] %vm49_vm0, %v1354_v52 }
 0x9be   :  { %1643 = shalt.err (!%p1640_p4)
}
 0x9bf   :  { %s1663_s2 = smov 128  }
 0x9c0   :  { %1369 = dma.vmem_to_hbm [thread:$0]  %s1364_s24, 256, %s1945_s3, [#allocation3], %s1663_s2, %s1663_s2, %s1659_s10  }
 0x9c1   :  { %1652 = dma.done.wait [#allocation3], 256  }
 0x9c2   :  { %1653 = vsyncadd [#allocation3], 4294967040 }
 0x9c3   :  { %1373 = vsyncpa [#allocation3], 1 }

</bundles_post_ra>
